<compile_context>
chip_gen: v6e
topology: v6e:2x2x1
jax: 0.10.0
libtpu: 0.0.40
codegen_flags: <defaults>
</compile_context>

<pallas_src>
import jax
import jax.numpy as jnp
from jax.experimental import pallas as pl
from jax.experimental.pallas import tpu as pltpu


def _round_up(n: int, m: int) -> int:
    return (n + m - 1) // m * m


def toy_mlp_kernel(x_ref, w1_ref, b1_ref, w2_ref, b2_ref, o_ref):
    # x_ref : (tb, 10)            w1_ref: (10, 10) [in, out]   b1_ref: (1, 10)
    # w2_ref: (10, 5)  [in, out]  b2_ref: (1, 5)               o_ref : (tb, 5)
    x = x_ref[...]
    # net1: x @ W1 + b1  (weights pre-transposed on host; f32 MXU accumulation)
    h = jnp.dot(x, w1_ref[...], preferred_element_type=jnp.float32) + b1_ref[...]
    # ReLU
    h = jnp.maximum(h, 0.0)
    # net2: h @ W2 + b2
    h = h.astype(w2_ref.dtype)
    y = jnp.dot(h, w2_ref[...], preferred_element_type=jnp.float32) + b2_ref[...]
    o_ref[...] = y.astype(o_ref.dtype)


def prepare_params(w1, b1, w2, b2, *, stream_dtype=jnp.float32):
    """One-time parameter prep (hoisted out of the hot forward path).

    PyTorch layout in: w1 (10,10) [out,in], b1 (1,10), w2 (5,10) [out,in], b2 (1,5).
    Returns (in, out)-layout weights (optionally narrowed) + f32 row biases.
    """
    w1_t = jnp.asarray(w1, jnp.float32).T.astype(stream_dtype)   # (10, 10) in x out
    w2_t = jnp.asarray(w2, jnp.float32).T.astype(stream_dtype)   # (10, 5)  in x out
    b1_r = jnp.asarray(b1, jnp.float32).reshape(1, -1)           # (1, 10)
    b2_r = jnp.asarray(b2, jnp.float32).reshape(1, -1)           # (1, 5)
    return w1_t, b1_r, w2_t, b2_r


def _choose_tile(batch: int, block_b: int):
    """Batch tile (multiple of 8 sublanes) and padded batch size."""
    b_eff = _round_up(max(batch, 8), 8)
    tb = min(_round_up(block_b, 8), b_eff)
    # Guarantee >= 2 grid steps when the batch allows it (v7x has 2 TCs/chip).
    if b_eff > 8 and tb >= b_eff:
        tb = _round_up((b_eff + 1) // 2, 8)
    b_pad = _round_up(b_eff, tb)
    return tb, b_pad


def toy_model_forward(x, params, *, block_b: int = 1024):
    """x: (B, 10); params from prepare_params(). Returns (B, 5) float32."""
    w1_t, b1_r, w2_t, b2_r = params
    B, f_in = x.shape
    f_hid = w1_t.shape[1]
    f_out = w2_t.shape[1]

    tb, b_pad = _choose_tile(B, block_b)

    x_in = x.astype(w1_t.dtype)
    if b_pad != B:
        # Only the tail tile is padded (natural 40 B/row width -- cheap).
        x_in = jnp.pad(x_in, ((0, b_pad - B), (0, 0)))

    vmem = pltpu.MemorySpace.VMEM
    grid = (b_pad // tb,)

    out = pl.pallas_call(
        toy_mlp_kernel,
        out_shape=jax.ShapeDtypeStruct((b_pad, f_out), jnp.float32),
        grid_spec=pltpu.PrefetchScalarGridSpec(
            num_scalar_prefetch=0,
            grid=grid,
            in_specs=[
                # streaming activation tile at natural (un-padded) feature width
                pl.BlockSpec((tb, f_in), lambda i: (i, 0), memory_space=vmem),
                # tiny VMEM-resident weights/biases (same block every step -> no re-DMA)
                pl.BlockSpec((f_in, f_hid), lambda i: (0, 0), memory_space=vmem),
                pl.BlockSpec((1, f_hid), lambda i: (0, 0), memory_space=vmem),
                pl.BlockSpec((f_hid, f_out), lambda i: (0, 0), memory_space=vmem),
                pl.BlockSpec((1, f_out), lambda i: (0, 0), memory_space=vmem),
            ],
            # natural (tb, 5) output block: last dim equals the full array dim
            out_specs=pl.BlockSpec((tb, f_out), lambda i: (i, 0), memory_space=vmem),
        ),
        compiler_params=pltpu.CompilerParams(
            dimension_semantics=("parallel",),
        ),
    )(x_in, w1_t, b1_r, w2_t, b2_r)

    if b_pad != B:
        out = out[:B]
    return out


def init_params(key):
    """Deterministic init mimicking nn.Linear defaults: U(-1/sqrt(fan_in), 1/sqrt(fan_in))."""
    k1, k2, k3, k4 = jax.random.split(key, 4)
    bound = 1.0 / jnp.sqrt(10.0)
    w1 = jax.random.uniform(k1, (10, 10), jnp.float32, -bound, bound)  # [out, in]
    b1 = jax.random.uniform(k2, (1, 10), jnp.float32, -bound, bound)
    w2 = jax.random.uniform(k3, (5, 10), jnp.float32, -bound, bound)   # [out, in]
    b2 = jax.random.uniform(k4, (1, 5), jnp.float32, -bound, bound)
    return w1, b1, w2, b2


def _reference(x, w1, b1, w2, b2, stream_dtype=jnp.float32):
    """Emulates the kernel's numerics for a given streaming dtype."""
    xc = x.astype(stream_dtype)
    w1c = jnp.asarray(w1, jnp.float32).astype(stream_dtype)
    w2c = jnp.asarray(w2, jnp.float32).astype(stream_dtype)
    h = jnp.dot(xc, w1c.T, preferred_element_type=jnp.float32) + b1
    h = jnp.maximum(h, 0.0).astype(stream_dtype)
    return jnp.dot(h, w2c.T, preferred_element_type=jnp.float32) + b2


if __name__ == "__main__":
    key = jax.random.PRNGKey(0)
    kx, kx2, kp = jax.random.split(key, 3)
    w1, b1, w2, b2 = init_params(kp)

    # One-time parameter prep (hoisted out of the forward hot path).
    params_f32 = prepare_params(w1, b1, w2, b2, stream_dtype=jnp.float32)

    # Small case (single grid step).
    batch = 8
    x = jax.random.normal(kx, (batch, 10), jnp.float32)
    out = toy_model_forward(x, params_f32)
    jax.block_until_ready(out)
    ref = _reference(x, w1, b1, w2, b2)
    assert out.shape == (batch, 5)
    assert jnp.allclose(out, ref, atol=1e-5, rtol=1e-5)

    # Larger ragged batch: exercises >=2 grid steps (megacore split) + tail padding.
    batch2 = 300
    x2 = jax.random.normal(kx2, (batch2, 10), jnp.float32)
    out2 = toy_model_forward(x2, params_f32)
    jax.block_until_ready(out2)
    ref2 = _reference(x2, w1, b1, w2, b2)
    assert out2.shape == (batch2, 5)
    assert jnp.allclose(out2, ref2, atol=1e-5, rtol=1e-5)

    # Optional bf16 streaming path (halves HBM bytes on v6e/v7x; f32 MXU accumulation).
    params_bf16 = prepare_params(w1, b1, w2, b2, stream_dtype=jnp.bfloat16)
    out3 = toy_model_forward(x2, params_bf16)
    jax.block_until_ready(out3)
    ref3 = _reference(x2, w1, b1, w2, b2, stream_dtype=jnp.bfloat16)
    assert out3.shape == (batch2, 5)
    assert jnp.allclose(out3, ref3, atol=1e-2, rtol=1e-2)

    print("KERNEL_OK")
</pallas_src>

<mosaic_0001>
module attributes {stable_mosaic.version = 11 : i64} {
  func.func @toy_mlp_kernel(%arg0: i32, %arg1: memref<8x10xf32, #tpu.memory_space<vmem>>, %arg2: memref<10x10xf32, #tpu.memory_space<vmem>>, %arg3: memref<1x10xf32, #tpu.memory_space<vmem>>, %arg4: memref<10x5xf32, #tpu.memory_space<vmem>>, %arg5: memref<1x5xf32, #tpu.memory_space<vmem>>, %arg6: memref<8x5xf32, #tpu.memory_space<vmem>>) attributes {dimension_semantics = [#tpu.dimension_semantics<parallel>], iteration_bounds = array<i64: 1>, scalar_prefetch = 0 : i64, scratch_operands = 0 : i64, tpu.core_type = #tpu.core_type<tc>, window_params = [{transform_indices = @transform_0, window_bounds = array<i64: 8, 10>}, {pipeline_mode = #tpu.pipeline_mode<synchronous>, transform_indices = @transform_1, window_bounds = array<i64: 10, 10>}, {pipeline_mode = #tpu.pipeline_mode<synchronous>, transform_indices = @transform_2, window_bounds = array<i64: 1, 10>}, {pipeline_mode = #tpu.pipeline_mode<synchronous>, transform_indices = @transform_3, window_bounds = array<i64: 10, 5>}, {pipeline_mode = #tpu.pipeline_mode<synchronous>, transform_indices = @transform_4, window_bounds = array<i64: 1, 5>}, {transform_indices = @transform_5, window_bounds = array<i64: 8, 5>}]} {
    %c0 = arith.constant 0 : index
    %c0_0 = arith.constant 0 : index
    %0 = vector.load %arg1[%c0, %c0_0] : memref<8x10xf32, #tpu.memory_space<vmem>>, vector<8x10xf32>
    %c0_1 = arith.constant 0 : index
    %c0_2 = arith.constant 0 : index
    %1 = vector.load %arg2[%c0_1, %c0_2] : memref<10x10xf32, #tpu.memory_space<vmem>>, vector<10x10xf32>
    %cst = arith.constant dense<0.000000e+00> : vector<8x10xf32>
    %2 = tpu.matmul %0, %1, %cst {dimension_numbers = #tpu.dot_dimension_numbers<[1], [0], [0], [1], [0, 0, 1, 1], [], []>} : vector<8x10xf32>, vector<10x10xf32>, vector<8x10xf32> -> vector<8x10xf32>
    %c0_3 = arith.constant 0 : index
    %c0_4 = arith.constant 0 : index
    %3 = vector.load %arg3[%c0_3, %c0_4] : memref<1x10xf32, #tpu.memory_space<vmem>>, vector<1x10xf32>
    %4 = vector.broadcast %3 : vector<1x10xf32> to vector<8x10xf32>
    %5 = arith.addf %2, %4 : vector<8x10xf32>
    %cst_5 = arith.constant 0.000000e+00 : f32
    %6 = vector.broadcast %cst_5 : f32 to vector<8x10xf32>
    %7 = arith.maximumf %5, %6 : vector<8x10xf32>
    %c0_6 = arith.constant 0 : index
    %c0_7 = arith.constant 0 : index
    %8 = vector.load %arg4[%c0_6, %c0_7] : memref<10x5xf32, #tpu.memory_space<vmem>>, vector<10x5xf32>
    %cst_8 = arith.constant dense<0.000000e+00> : vector<8x5xf32>
    %9 = tpu.matmul %7, %8, %cst_8 {dimension_numbers = #tpu.dot_dimension_numbers<[1], [0], [0], [1], [0, 0, 1, 1], [], []>} : vector<8x10xf32>, vector<10x5xf32>, vector<8x5xf32> -> vector<8x5xf32>
    %c0_9 = arith.constant 0 : index
    %c0_10 = arith.constant 0 : index
    %10 = vector.load %arg5[%c0_9, %c0_10] : memref<1x5xf32, #tpu.memory_space<vmem>>, vector<1x5xf32>
    %11 = vector.broadcast %10 : vector<1x5xf32> to vector<8x5xf32>
    %12 = arith.addf %9, %11 : vector<8x5xf32>
    %c0_11 = arith.constant 0 : index
    %c0_12 = arith.constant 0 : index
    %13 = vector.load %arg6[%c0_11, %c0_12] : memref<8x5xf32, #tpu.memory_space<vmem>>, vector<8x5xf32>
    tpu.vector_store %arg6[%c0_11, %c0_12], %12 {strides = array<i32>} : memref<8x5xf32, #tpu.memory_space<vmem>>, vector<8x5xf32>,
    return
  }
  func.func @transform_0(%arg0: i32) -> (i32, i32) {
    %c0_i32 = arith.constant 0 : i32
    %c0_i32_0 = arith.constant 0 : i32
    return %arg0, %c0_i32 : i32, i32
  }
  func.func @transform_1(%arg0: i32) -> (i32, i32) {
    %c0_i32 = arith.constant 0 : i32
    %c0_i32_0 = arith.constant 0 : i32
    %c0_i32_1 = arith.constant 0 : i32
    return %c0_i32, %c0_i32_0 : i32, i32
  }
  func.func @transform_2(%arg0: i32) -> (i32, i32) {
    %c0_i32 = arith.constant 0 : i32
    %c0_i32_0 = arith.constant 0 : i32
    %c0_i32_1 = arith.constant 0 : i32
    return %c0_i32, %c0_i32_0 : i32, i32
  }
  func.func @transform_3(%arg0: i32) -> (i32, i32) {
    %c0_i32 = arith.constant 0 : i32
    %c0_i32_0 = arith.constant 0 : i32
    %c0_i32_1 = arith.constant 0 : i32
    return %c0_i32, %c0_i32_0 : i32, i32
  }
  func.func @transform_4(%arg0: i32) -> (i32, i32) {
    %c0_i32 = arith.constant 0 : i32
    %c0_i32_0 = arith.constant 0 : i32
    %c0_i32_1 = arith.constant 0 : i32
    return %c0_i32, %c0_i32_0 : i32, i32
  }
  func.func @transform_5(%arg0: i32) -> (i32, i32) {
    %c0_i32 = arith.constant 0 : i32
    %c0_i32_0 = arith.constant 0 : i32
    return %arg0, %c0_i32 : i32, i32
  }
}

</mosaic_0001>

<bundles_post_ra>
// kernel: tpu_custom_call.1
= control target key start
LH: loop header
LB: loop body
LE: loop exit
PB: predicated region body
PF: predicated region fallthrough
CT: control target
= control target key end

     0   :  { %vm35_vm0 = vcmask 1041408   ;;  %v262_v1 = vmov 0.0   ;;  %vm263_vm1 = vmmov 0   ;;  %s323_s0 = inlined_call_operand.vmem [shape: f32[8,10], index: 0, kind: input, shape index: {}]   ;;  %s324_s1 = inlined_call_operand.vmem [shape: f32[10,10], index: 1, kind: input, shape index: {}]   ;;  %s325_s2 = inlined_call_operand.vmem [shape: f32[1,10], index: 2, kind: input, shape index: {}]   ;;  %s326_s3 = inlined_call_operand.vmem [shape: f32[10,5], index: 3, kind: input, shape index: {}]   ;;  %s327_s4 = inlined_call_operand.vmem [shape: f32[1,5], index: 4, kind: input, shape index: {}]   ;;  %s328_s5 = inlined_call_operand.hbm [shape: f32[8,5], index: 5, kind: output, shape index: {}]  }
   0x1   :  { %v23_v0 = vld [vmem:[%s324_s1 + $0x8] sm:$0x3]  ;;  %223 = vmatprep.subr.mxu0 %v262_v1  ;;  %v22_v2 = vld [vmem:[%s324_s1] sm:$0xff]  ;;  %227 = vmatprep.mubr.msk.f32.mxu0 %vm263_vm1, %v262_v1 }
   0x2   :  { %10 = vsyncpa [#allocation3], 0  ;;  %224 = vmatpush3.msk.msra.mxu0 %vm35_vm0, %v23_v0  ;;  %v21_v3 = vld [vmem:[%s323_s0] sm:$0xff]  ;;  %vm31_vm2 = vcmask 80896   ;;  %230 = vmatprep.subr.mxu1 %v262_v1  ;;  %v111_v4 = vld [vmem:[%s326_s3 + $0x8] sm:$0x3] }
   0x3   :  { %225 = vmatprep.subr.mxu0 %v262_v1  ;;  %234 = vmatprep.mubr.msk.f32.mxu1 %vm263_vm1, %v262_v1  ;;  %v110_v5 = vld [vmem:[%s326_s3] sm:$0xff]  ;;  %s264_s30 = smov [#allocation2]   ;;  %vm195_vm3 = vcmask 39936  }
   0x4   :  { %226 = vmatpush3.msra.mxu0 %v22_v2  ;;  %231 = vmatpush3.msk.msra.mxu1 %vm35_vm0, %v111_v4  ;;  %v211_v6 = vld [vmem:[%s325_s2] ss:$0 sm:$0xff]  ;;  %s203_s6 = sshll.u32 %s264_s30, 4  ;;  %s204_s6 = int_to_ptr.vmem [resolvable:$true] %s203_s6 }
   0x5   :  { %228 = vmatmul.mubr.msk.f32.vlgmr.msra.gmra.mxu0 %vm31_vm2, %v21_v3  ;;  %232 = vmatprep.subr.mxu1 %v262_v1  ;;  %v214_v11 = vld [vmem:[%s327_s4] ss:$0 sm:$0xff]  ;;  %s240_s3 = scalar_lea.vmem %s204_s6, 128  ;;  %p245_p1 = scmp.lt.s32.totalorder %s204_s6, %s204_s6 }
   0x6   :  { %233 = vmatpush3.msra.mxu1 %v110_v5  ;;  %p241_p0 = scmp.ne.s32.totalorder %s204_s6, %s240_s3  ;;  %p246_p2 = scmp.lt.s32.totalorder %s240_s3, %s240_s3 }
   0x8   :  { %p247_p3 = por %p246_p2, %p245_p1 }
   0xa   :  { %p248_p4 = pnand %p247_p3, %p241_p0 }
  0xc5   :  { %v105_v7 = vpop.f32.mrf.mxu0 }
  0xc6   :  { %v106_v8 = vadd.f32 %v211_v6, %v105_v7 }
  0xc7   :  { %v229_v9 = vpop.f32.mrf.mxu0 }
  0xc8   :  { %v109_v10 = vmax.f32 %v106_v8, 0.0 }
  0xca   :  { %235 = vmatmul.mubr.msk.f32.vlgmr.msra.gmra.mxu1 %vm31_vm2, %v109_v10 }
 0x18a   :  { %v191_v12 = vpop.f32.mrf.mxu1 }
 0x18b   :  { %v192_v13 = vadd.f32 %v214_v11, %v191_v12 }
 0x18c   :  { %v236_v14 = vpop.f32.mrf.mxu1 }
 0x18d   :  { %196 = vst.msk [vmem:[#allocation2] sm:$0xff] %vm195_vm3, %v192_v13 }
 0x18e   :  { %251 = shalt.err (!%p248_p4)
}
 0x18f   :  { %206 = dma.vmem_to_hbm [thread:$0]  %s204_s6, 128, %s328_s5, [#allocation3]  }
 0x190   :  { %260 = dma.done.wait [#allocation3], 128  }
 0x191   :  { %261 = vsyncadd [#allocation3], 4294967168 }
 0x192   :  { %210 = vsyncpa [#allocation3], 1 }

</bundles_post_ra>
